<compile_context>
chip_gen: v7x
topology: tpu7x:2x2x1
jax: 0.10.0
libtpu: 0.0.40
codegen_flags: <defaults>
</compile_context>

<pallas_src>
import functools
import math

import jax
import jax.numpy as jnp
from jax import lax
from jax.experimental import pallas as pl
from jax.experimental.pallas import tpu as pltpu


def _round_up(v, m):
    return (v + m - 1) // m * m


def _basic_block_kernel(x_ref, w1_ref, b1_ref, w2_ref, b2_ref, o_ref,
                        xpad_ref, mid_ref, *, cl_lane):
    """One grid step = B_TILE images.

    x_ref    : (1, Bt, H, W*C)  bf16  NHWC activations, W and C merged (lanes)
    w1_ref   : (3*Wp*C, Wp*C)   bf16  conv1 block-banded weights (BN1 folded)
    b1_ref   : (1, Wp*C)        f32   BN1 bias tiled across the padded row
    w2_ref   : (3*Wp*C, Wp*C)   bf16  conv2 block-banded weights (BN2 folded)
    b2_ref   : (1, Wp*C)        f32   BN2 bias tiled across the padded row
    o_ref    : (1, Mp, Wp*C)    f32   output (padded width, incl. gap rows)
    xpad_ref : (Rt, Wp*C)       bf16  VMEM scratch: padded input rows
    mid_ref  : (Rt, Wp*C)       bf16  VMEM scratch: padded relu(bn1(conv1))

    Row layout: Rt = Bt*(H+1) + 1 padded rows; row n*(H+1) is a shared zero
    halo between consecutive images, rows n*(H+1)+1 .. n*(H+1)+H hold image n.
    Big-matmul output row r corresponds to the 3-row window starting at padded
    row r; it is a real output row (image n, row h) iff r = n*(H+1)+h, h < H.
    """
    f32 = jnp.float32
    bdt = xpad_ref.dtype
    Bt, H, WC = x_ref.shape[1], x_ref.shape[2], x_ref.shape[3]
    Rt, L = xpad_ref.shape
    Hp = H + 1
    Mp = Rt - 2                      # == o_ref.shape[1]

    # ---- stage the zero-padded input: one full-lane zero fill, then the per-
    # ---- image interiors.  Every scratch byte is written every step. -------
    xpad_ref[...] = jnp.zeros((Rt, L), bdt)
    for n in range(Bt):              # Bt is a small static Python int
        r0 = n * Hp + 1
        xpad_ref[r0:r0 + H, cl_lane:cl_lane + WC] = x_ref[0, n]

    # ---- conv1 (+ folded BN1): ONE MXU matmul over all output rows ---------
    x_c = xpad_ref[1:1 + Mp, :]                        # centre rows = residual
    xwin = jnp.concatenate(
        [xpad_ref[0:Mp, :], x_c, xpad_ref[2:2 + Mp, :]], axis=1)
    acc1 = jnp.dot(xwin, w1_ref[...], preferred_element_type=f32) + b1_ref[...]

    # relu, then zero junk pad columns and inter-image gap rows so the implicit
    # zero padding seen by conv2 stays exact.
    row = lax.broadcasted_iota(jnp.int32, (Mp, L), 0)
    col = lax.broadcasted_iota(jnp.int32, (Mp, L), 1)
    valid = ((row % Hp) < H) & (col >= cl_lane) & (col < cl_lane + WC)
    out1 = jnp.where(valid, jnp.maximum(acc1, 0.0), 0.0).astype(bdt)

    mid_ref[0:1, :] = jnp.zeros((1, L), bdt)
    mid_ref[Rt - 1:Rt, :] = jnp.zeros((1, L), bdt)
    mid_ref[1:1 + Mp, :] = out1

    # ---- conv2 (+ folded BN2) + identity residual, final relu --------------
    mwin = jnp.concatenate(
        [mid_ref[0:Mp, :], out1, mid_ref[2:2 + Mp, :]], axis=1)
    acc2 = (jnp.dot(mwin, w2_ref[...], preferred_element_type=f32)
            + b2_ref[...] + x_c.astype(f32))
    o_ref[0] = jnp.maximum(acc2, 0.0)


def _expand_conv3x3(w_oihw, scale, Wp):
    """Fold the BN scale into a 3x3 conv (OIHW) and expand it to the
    block-banded (3*Wp*C_in, Wp*C_out) matrix used by the whole-row matmul."""
    C_in, C_out = w_oihw.shape[1], w_oihw.shape[0]
    w_hwio = jnp.transpose(w_oihw, (2, 3, 1, 0)).astype(jnp.float32)
    w_hwio = (w_hwio * scale[None, None, None, :]).astype(jnp.bfloat16)
    w_hwio = w_hwio.astype(jnp.float32)          # bf16 rounding point
    # eye_k[kw, w_in, w_out] = 1 iff w_in == w_out + kw - 1
    eye_k = jnp.stack(
        [jnp.eye(Wp, M=Wp, k=1 - kw, dtype=jnp.float32) for kw in range(3)])
    wbig = jnp.einsum('xab,hxio->haibo', eye_k, w_hwio)
    return wbig.reshape(3 * Wp * C_in, Wp * C_out).astype(jnp.bfloat16)


@functools.partial(jax.jit, static_argnames=("eps",))
def basic_block_forward(x_nchw,
                        w1, gamma1, beta1, mean1, var1,
                        w2, gamma2, beta2, mean2, var2,
                        eps=1e-5):
    """x_nchw: (N, C, H, W) float32 (PyTorch layout). Returns (N, C, H, W) f32."""
    N, C, H, W = x_nchw.shape
    assert w1.shape == (C, C, 3, 3) and w2.shape == (C, C, 3, 3), \
        "identity shortcut only"
    # TODO(synk): downsample / stride != 1 branch of BasicBlock not implemented.

    # Padded-row geometry: Wp*C must be a multiple of 128 so every load, MXU
    # output and HBM store is lane-dense.
    lane_q = 128 // math.gcd(C, 128)
    Wp = _round_up(W + 2, lane_q)
    CL = (Wp - W) // 2               # left zero pad (>= 1, right pad >= 1)
    L = Wp * C
    assert L <= 4096, "padded row too wide for the block-banded weight trick"

    Bt = max(1, min(N, 256 // (H + 1)))   # images packed per grid step
    S = pl.cdiv(N, Bt)
    Npad = S * Bt
    Rt = Bt * (H + 1) + 1
    Mp = Rt - 2

    # NCHW -> NHWC bf16, merge W and C into the lane dim, pack Bt per step.
    x = jnp.transpose(x_nchw, (0, 2, 3, 1)).astype(jnp.bfloat16)
    if Npad != N:
        x = jnp.pad(x, ((0, Npad - N), (0, 0), (0, 0), (0, 0)))
    x = x.reshape(S, Bt, H, W * C)

    # Fold eval-mode BN into the convs: scale into the weights' output
    # channels, bias kept separate (added to the f32 accumulator in-kernel).
    s1 = (gamma1 / jnp.sqrt(var1 + eps)).astype(jnp.float32)
    b1 = (beta1 - mean1 * s1).astype(jnp.float32)
    s2 = (gamma2 / jnp.sqrt(var2 + eps)).astype(jnp.float32)
    b2 = (beta2 - mean2 * s2).astype(jnp.float32)

    w1b = _expand_conv3x3(w1, s1, Wp)
    w2b = _expand_conv3x3(w2, s2, Wp)
    b1r = jnp.tile(b1, Wp).reshape(1, L)
    b2r = jnp.tile(b2, Wp).reshape(1, L)

    kernel = functools.partial(_basic_block_kernel, cl_lane=CL * C)
    out_raw = pl.pallas_call(
        kernel,
        out_shape=jax.ShapeDtypeStruct((S, Mp, L), jnp.float32),
        grid_spec=pltpu.PrefetchScalarGridSpec(
            num_scalar_prefetch=0,
            grid=(S,),
            in_specs=[
                pl.BlockSpec((1, Bt, H, W * C), lambda s: (s, 0, 0, 0)),
                pl.BlockSpec((3 * L, L), lambda s: (0, 0)),
                pl.BlockSpec((1, L), lambda s: (0, 0)),
                pl.BlockSpec((3 * L, L), lambda s: (0, 0)),
                pl.BlockSpec((1, L), lambda s: (0, 0)),
            ],
            out_specs=pl.BlockSpec((1, Mp, L), lambda s: (s, 0, 0)),
            scratch_shapes=[
                pltpu.VMEM((Rt, L), jnp.bfloat16),   # padded input rows
                pltpu.VMEM((Rt, L), jnp.bfloat16),   # padded mid activation
            ],
        ),
        compiler_params=pltpu.CompilerParams(
            dimension_semantics=("parallel",)),
    )(x, w1b, b1r, w2b, b2r)

    # Lane-dense kernel output -> drop gap rows & pad columns, back to NCHW.
    out = out_raw.reshape(S, Mp, Wp, C)
    out = jnp.pad(out, ((0, 0), (0, 1), (0, 0), (0, 0)))   # Mp+1 = Bt*(H+1)
    out = out.reshape(S, Bt, H + 1, Wp, C)[:, :, :H, CL:CL + W, :]
    out = out.reshape(S * Bt, H, W, C)[:N]
    return jnp.transpose(out, (0, 3, 1, 2))


def _reference_forward_f32(x_nchw, w1, g1, be1, m1, v1, w2, g2, be2, m2, v2,
                           eps=1e-5):
    """Pure-JAX f32 reference mirroring the PyTorch module."""
    x = jnp.transpose(x_nchw, (0, 2, 3, 1))
    dn = ('NHWC', 'HWIO', 'NHWC')
    w1h = jnp.transpose(w1, (2, 3, 1, 0))
    w2h = jnp.transpose(w2, (2, 3, 1, 0))

    def bn(y, g, b, m, v):
        return (y - m) / jnp.sqrt(v + eps) * g + b

    o = lax.conv_general_dilated(x, w1h, (1, 1), 'SAME', dimension_numbers=dn,
                                 precision=lax.Precision.HIGHEST)
    o = jnp.maximum(bn(o, g1, be1, m1, v1), 0.0)
    o = lax.conv_general_dilated(o, w2h, (1, 1), 'SAME', dimension_numbers=dn,
                                 precision=lax.Precision.HIGHEST)
    o = bn(o, g2, be2, m2, v2) + x
    o = jnp.maximum(o, 0.0)
    return jnp.transpose(o, (0, 3, 1, 2))


def _reference_forward_bf16(x_nchw, w1, g1, be1, m1, v1, w2, g2, be2, m2, v2,
                            eps=1e-5):
    """Reference with the same bf16 rounding points as the kernel."""
    f32, bf16 = jnp.float32, jnp.bfloat16
    x = jnp.transpose(x_nchw, (0, 2, 3, 1)).astype(bf16).astype(f32)
    s1 = g1 / jnp.sqrt(v1 + eps)
    b1 = be1 - m1 * s1
    s2 = g2 / jnp.sqrt(v2 + eps)
    b2 = be2 - m2 * s2
    w1f = (jnp.transpose(w1, (2, 3, 1, 0)) * s1).astype(bf16).astype(f32)
    w2f = (jnp.transpose(w2, (2, 3, 1, 0)) * s2).astype(bf16).astype(f32)
    dn = ('NHWC', 'HWIO', 'NHWC')
    o = lax.conv_general_dilated(x, w1f, (1, 1), 'SAME', dimension_numbers=dn,
                                 precision=lax.Precision.HIGHEST) + b1
    o = jnp.maximum(o, 0.0).astype(bf16).astype(f32)
    o = lax.conv_general_dilated(o, w2f, (1, 1), 'SAME', dimension_numbers=dn,
                                 precision=lax.Precision.HIGHEST) + b2
    o = jnp.maximum(o + x, 0.0)
    return jnp.transpose(o, (0, 3, 1, 2))


if __name__ == "__main__":
    key = jax.random.PRNGKey(0)
    N, C, H, W = 2, 4, 16, 16        # inplanes = planes = 4, stride = 1
    ks = jax.random.split(key, 11)

    x = jax.random.normal(ks[0], (N, C, H, W), jnp.float32)
    w1 = jax.random.normal(ks[1], (C, C, 3, 3), jnp.float32) * 0.2
    w2 = jax.random.normal(ks[2], (C, C, 3, 3), jnp.float32) * 0.2
    gamma1 = 1.0 + 0.1 * jax.random.normal(ks[3], (C,), jnp.float32)
    beta1 = 0.1 * jax.random.normal(ks[4], (C,), jnp.float32)
    mean1 = 0.1 * jax.random.normal(ks[5], (C,), jnp.float32)
    var1 = 1.0 + 0.1 * jnp.abs(jax.random.normal(ks[6], (C,), jnp.float32))
    gamma2 = 1.0 + 0.1 * jax.random.normal(ks[7], (C,), jnp.float32)
    beta2 = 0.1 * jax.random.normal(ks[8], (C,), jnp.float32)
    mean2 = 0.1 * jax.random.normal(ks[9], (C,), jnp.float32)
    var2 = 1.0 + 0.1 * jnp.abs(jax.random.normal(ks[10], (C,), jnp.float32))

    out = basic_block_forward(x, w1, gamma1, beta1, mean1, var1,
                              w2, gamma2, beta2, mean2, var2)
    out = jax.block_until_ready(out)
    assert out.shape == (N, C, H, W)

    # Kernel-math check (same bf16 rounding points as the kernel).
    ref_bf16 = _reference_forward_bf16(x, w1, gamma1, beta1, mean1, var1,
                                       w2, gamma2, beta2, mean2, var2)
    assert jnp.max(jnp.abs(out - ref_bf16)) < 2e-2, "mismatch vs bf16 reference"

    # Sanity check against the exact f32 module semantics (bf16 tolerance).
    ref_f32 = _reference_forward_f32(x, w1, gamma1, beta1, mean1, var1,
                                     w2, gamma2, beta2, mean2, var2)
    assert jnp.max(jnp.abs(out - ref_f32)) < 1.5e-1, "mismatch vs f32 reference"

    print("KERNEL_OK")
</pallas_src>

<mosaic_0001>
module attributes {stable_mosaic.version = 11 : i64} {
  func.func @_basic_block_kernel(%arg0: i32, %arg1: memref<1x2x16x64xbf16, #tpu.memory_space<vmem>>, %arg2: memref<384x128xbf16, #tpu.memory_space<vmem>>, %arg3: memref<1x128xf32, #tpu.memory_space<vmem>>, %arg4: memref<384x128xbf16, #tpu.memory_space<vmem>>, %arg5: memref<1x128xf32, #tpu.memory_space<vmem>>, %arg6: memref<1x33x128xf32, #tpu.memory_space<vmem>>, %arg7: memref<35x128xbf16, #tpu.memory_space<vmem>>, %arg8: memref<35x128xbf16, #tpu.memory_space<vmem>>) attributes {dimension_semantics = [#tpu.dimension_semantics<parallel>], iteration_bounds = array<i64: 1>, scalar_prefetch = 0 : i64, scratch_operands = 2 : i64, tpu.core_type = #tpu.core_type<tc>, window_params = [{transform_indices = @transform_0, window_bounds = array<i64: 1, 2, 16, 64>}, {pipeline_mode = #tpu.pipeline_mode<synchronous>, transform_indices = @transform_1, window_bounds = array<i64: 384, 128>}, {pipeline_mode = #tpu.pipeline_mode<synchronous>, transform_indices = @transform_2, window_bounds = array<i64: 1, 128>}, {pipeline_mode = #tpu.pipeline_mode<synchronous>, transform_indices = @transform_3, window_bounds = array<i64: 384, 128>}, {pipeline_mode = #tpu.pipeline_mode<synchronous>, transform_indices = @transform_4, window_bounds = array<i64: 1, 128>}, {transform_indices = @transform_5, window_bounds = array<i64: 1, 33, 128>}]} {
    %cst = arith.constant 0.000000e+00 : bf16
    %0 = vector.broadcast %cst : bf16 to vector<35x128xbf16>
    %c0 = arith.constant 0 : index
    %c0_0 = arith.constant 0 : index
    %1 = vector.load %arg7[%c0, %c0_0] : memref<35x128xbf16, #tpu.memory_space<vmem>>, vector<35x128xbf16>
    tpu.vector_store %arg7[%c0, %c0_0], %0 {strides = array<i32>} : memref<35x128xbf16, #tpu.memory_space<vmem>>, vector<35x128xbf16>,
    %c0_1 = arith.constant 0 : index
    %c0_2 = arith.constant 0 : index
    %c0_3 = arith.constant 0 : index
    %c0_4 = arith.constant 0 : index
    %2 = vector.load %arg1[%c0_1, %c0_2, %c0_3, %c0_4] : memref<1x2x16x64xbf16, #tpu.memory_space<vmem>>, vector<1x1x16x64xbf16>
    %3 = vector.shape_cast %2 : vector<1x1x16x64xbf16> to vector<16x64xbf16>
    %c1 = arith.constant 1 : index
    %c32 = arith.constant 32 : index
    %4 = vector.load %arg7[%c1, %c32] : memref<35x128xbf16, #tpu.memory_space<vmem>>, vector<16x64xbf16>
    tpu.vector_store %arg7[%c1, %c32], %3 {strides = array<i32>} : memref<35x128xbf16, #tpu.memory_space<vmem>>, vector<16x64xbf16>,
    %c0_5 = arith.constant 0 : index
    %c1_6 = arith.constant 1 : index
    %c0_7 = arith.constant 0 : index
    %c0_8 = arith.constant 0 : index
    %5 = vector.load %arg1[%c0_5, %c1_6, %c0_7, %c0_8] : memref<1x2x16x64xbf16, #tpu.memory_space<vmem>>, vector<1x1x16x64xbf16>
    %6 = vector.shape_cast %5 : vector<1x1x16x64xbf16> to vector<16x64xbf16>
    %c18 = arith.constant 18 : index
    %c32_9 = arith.constant 32 : index
    %7 = vector.load %arg7[%c18, %c32_9] : memref<35x128xbf16, #tpu.memory_space<vmem>>, vector<16x64xbf16>
    tpu.vector_store %arg7[%c18, %c32_9], %6 {strides = array<i32>} : memref<35x128xbf16, #tpu.memory_space<vmem>>, vector<16x64xbf16>,
    %c1_10 = arith.constant 1 : index
    %c0_11 = arith.constant 0 : index
    %8 = vector.load %arg7[%c1_10, %c0_11] : memref<35x128xbf16, #tpu.memory_space<vmem>>, vector<33x128xbf16>
    %c0_12 = arith.constant 0 : index
    %c0_13 = arith.constant 0 : index
    %9 = vector.load %arg7[%c0_12, %c0_13] : memref<35x128xbf16, #tpu.memory_space<vmem>>, vector<33x128xbf16>
    %c2 = arith.constant 2 : index
    %c0_14 = arith.constant 0 : index
    %10 = vector.load %arg7[%c2, %c0_14] : memref<35x128xbf16, #tpu.memory_space<vmem>>, vector<33x128xbf16>
    %11 = tpu.concatenate %9, %8, %10 in 1 : vector<33x128xbf16>, vector<33x128xbf16>, vector<33x128xbf16> -> vector<33x384xbf16>
    %c0_15 = arith.constant 0 : index
    %c0_16 = arith.constant 0 : index
    %12 = vector.load %arg2[%c0_15, %c0_16] : memref<384x128xbf16, #tpu.memory_space<vmem>>, vector<384x128xbf16>
    %cst_17 = arith.constant dense<0.000000e+00> : vector<33x128xf32>
    %13 = tpu.matmul %11, %12, %cst_17 {dimension_numbers = #tpu.dot_dimension_numbers<[1], [0], [0], [1], [0, 0, 1, 1], [], []>} : vector<33x384xbf16>, vector<384x128xbf16>, vector<33x128xf32> -> vector<33x128xf32>
    %c0_18 = arith.constant 0 : index
    %c0_19 = arith.constant 0 : index
    %14 = vector.load %arg3[%c0_18, %c0_19] : memref<1x128xf32, #tpu.memory_space<vmem>>, vector<1x128xf32>
    %15 = vector.broadcast %14 : vector<1x128xf32> to vector<33x128xf32>
    %16 = arith.addf %13, %15 : vector<33x128xf32>
    %17 = tpu.iota {dimensions = array<i32: 0>} : vector<33x128xi32>
    %18 = tpu.iota {dimensions = array<i32: 1>} : vector<33x128xi32>
    %c17_i32 = arith.constant 17 : i32
    %c0_i32 = arith.constant 0 : i32
    %19 = arith.cmpi eq, %c17_i32, %c0_i32 : i32
    %c1_i32 = arith.constant 1 : i32
    %20 = arith.select %19, %c1_i32, %c17_i32 : i32
    %21 = vector.broadcast %20 : i32 to vector<33x128xi32>
    %22 = arith.remsi %17, %21 : vector<33x128xi32>
    %c0_i32_20 = arith.constant 0 : i32
    %23 = vector.broadcast %c0_i32_20 : i32 to vector<33x128xi32>
    %24 = arith.cmpi ne, %22, %23 : vector<33x128xi32>
    %c0_i32_21 = arith.constant 0 : i32
    %25 = vector.broadcast %c0_i32_21 : i32 to vector<33x128xi32>
    %26 = arith.cmpi slt, %22, %25 : vector<33x128xi32>
    %c0_i32_22 = arith.constant 0 : i32
    %27 = arith.cmpi slt, %20, %c0_i32_22 : i32
    %28 = vector.broadcast %27 : i1 to vector<33x128xi1>
    %29 = vector.broadcast %28 : vector<33x128xi1> to vector<33x128xi1>
    %30 = arith.xori %26, %29 : vector<33x128xi1>
    %31 = arith.andi %30, %24 : vector<33x128xi1>
    %32 = vector.broadcast %20 : i32 to vector<33x128xi32>
    %33 = arith.addi %22, %32 : vector<33x128xi32>
    %34 = arith.select %31, %33, %22 : vector<33x128xi1>, vector<33x128xi32>
    %c16_i32 = arith.constant 16 : i32
    %35 = vector.broadcast %c16_i32 : i32 to vector<33x128xi32>
    %36 = arith.cmpi slt, %34, %35 : vector<33x128xi32>
    %c32_i32 = arith.constant 32 : i32
    %37 = vector.broadcast %c32_i32 : i32 to vector<33x128xi32>
    %38 = arith.cmpi sge, %18, %37 : vector<33x128xi32>
    %39 = arith.andi %36, %38 : vector<33x128xi1>
    %c96_i32 = arith.constant 96 : i32
    %40 = vector.broadcast %c96_i32 : i32 to vector<33x128xi32>
    %41 = arith.cmpi slt, %18, %40 : vector<33x128xi32>
    %42 = arith.andi %39, %41 : vector<33x128xi1>
    %cst_23 = arith.constant 0.000000e+00 : f32
    %43 = vector.broadcast %cst_23 : f32 to vector<33x128xf32>
    %44 = arith.maximumf %16, %43 : vector<33x128xf32>
    %cst_24 = arith.constant 0.000000e+00 : f32
    %45 = vector.broadcast %cst_24 : f32 to vector<33x128xf32>
    %46 = arith.select %42, %44, %45 : vector<33x128xi1>, vector<33x128xf32>
    %47 = arith.truncf %46 : vector<33x128xf32> to vector<33x128xbf16>
    %cst_25 = arith.constant 0.000000e+00 : bf16
    %48 = vector.broadcast %cst_25 : bf16 to vector<1x128xbf16>
    %c0_26 = arith.constant 0 : index
    %c0_27 = arith.constant 0 : index
    %49 = vector.load %arg8[%c0_26, %c0_27] : memref<35x128xbf16, #tpu.memory_space<vmem>>, vector<1x128xbf16>
    tpu.vector_store %arg8[%c0_26, %c0_27], %48 {strides = array<i32>} : memref<35x128xbf16, #tpu.memory_space<vmem>>, vector<1x128xbf16>,
    %cst_28 = arith.constant 0.000000e+00 : bf16
    %50 = vector.broadcast %cst_28 : bf16 to vector<1x128xbf16>
    %c34 = arith.constant 34 : index
    %c0_29 = arith.constant 0 : index
    %51 = vector.load %arg8[%c34, %c0_29] : memref<35x128xbf16, #tpu.memory_space<vmem>>, vector<1x128xbf16>
    tpu.vector_store %arg8[%c34, %c0_29], %50 {strides = array<i32>} : memref<35x128xbf16, #tpu.memory_space<vmem>>, vector<1x128xbf16>,
    %c1_30 = arith.constant 1 : index
    %c0_31 = arith.constant 0 : index
    %52 = vector.load %arg8[%c1_30, %c0_31] : memref<35x128xbf16, #tpu.memory_space<vmem>>, vector<33x128xbf16>
    tpu.vector_store %arg8[%c1_30, %c0_31], %47 {strides = array<i32>} : memref<35x128xbf16, #tpu.memory_space<vmem>>, vector<33x128xbf16>,
    %c0_32 = arith.constant 0 : index
    %c0_33 = arith.constant 0 : index
    %53 = vector.load %arg8[%c0_32, %c0_33] : memref<35x128xbf16, #tpu.memory_space<vmem>>, vector<33x128xbf16>
    %c2_34 = arith.constant 2 : index
    %c0_35 = arith.constant 0 : index
    %54 = vector.load %arg8[%c2_34, %c0_35] : memref<35x128xbf16, #tpu.memory_space<vmem>>, vector<33x128xbf16>
    %55 = tpu.concatenate %53, %47, %54 in 1 : vector<33x128xbf16>, vector<33x128xbf16>, vector<33x128xbf16> -> vector<33x384xbf16>
    %c0_36 = arith.constant 0 : index
    %c0_37 = arith.constant 0 : index
    %56 = vector.load %arg4[%c0_36, %c0_37] : memref<384x128xbf16, #tpu.memory_space<vmem>>, vector<384x128xbf16>
    %cst_38 = arith.constant dense<0.000000e+00> : vector<33x128xf32>
    %57 = tpu.matmul %55, %56, %cst_38 {dimension_numbers = #tpu.dot_dimension_numbers<[1], [0], [0], [1], [0, 0, 1, 1], [], []>} : vector<33x384xbf16>, vector<384x128xbf16>, vector<33x128xf32> -> vector<33x128xf32>
    %c0_39 = arith.constant 0 : index
    %c0_40 = arith.constant 0 : index
    %58 = vector.load %arg5[%c0_39, %c0_40] : memref<1x128xf32, #tpu.memory_space<vmem>>, vector<1x128xf32>
    %59 = vector.broadcast %58 : vector<1x128xf32> to vector<33x128xf32>
    %60 = arith.addf %57, %59 : vector<33x128xf32>
    %61 = arith.extf %8 : vector<33x128xbf16> to vector<33x128xf32>
    %62 = arith.addf %60, %61 : vector<33x128xf32>
    %cst_41 = arith.constant 0.000000e+00 : f32
    %63 = vector.broadcast %cst_41 : f32 to vector<33x128xf32>
    %64 = arith.maximumf %62, %63 : vector<33x128xf32>
    %c0_42 = arith.constant 0 : index
    %c0_43 = arith.constant 0 : index
    %c0_44 = arith.constant 0 : index
    %65 = vector.load %arg6[%c0_42, %c0_43, %c0_44] : memref<1x33x128xf32, #tpu.memory_space<vmem>>, vector<1x33x128xf32>
    %66 = vector.shape_cast %65 : vector<1x33x128xf32> to vector<33x128xf32>
    %67 = vector.shape_cast %64 : vector<33x128xf32> to vector<1x33x128xf32>
    tpu.vector_store %arg6[%c0_42, %c0_43, %c0_44], %67 {strides = array<i32>} : memref<1x33x128xf32, #tpu.memory_space<vmem>>, vector<1x33x128xf32>,
    return
  }
  func.func @transform_0(%arg0: i32) -> (i32, i32, i32, i32) {
    %c0_i32 = arith.constant 0 : i32
    %c0_i32_0 = arith.constant 0 : i32
    %c0_i32_1 = arith.constant 0 : i32
    %c0_i32_2 = arith.constant 0 : i32
    return %arg0, %c0_i32, %c0_i32_0, %c0_i32_1 : i32, i32, i32, i32
  }
  func.func @transform_1(%arg0: i32) -> (i32, i32) {
    %c0_i32 = arith.constant 0 : i32
    %c0_i32_0 = arith.constant 0 : i32
    %c0_i32_1 = arith.constant 0 : i32
    return %c0_i32, %c0_i32_0 : i32, i32
  }
  func.func @transform_2(%arg0: i32) -> (i32, i32) {
    %c0_i32 = arith.constant 0 : i32
    %c0_i32_0 = arith.constant 0 : i32
    %c0_i32_1 = arith.constant 0 : i32
    return %c0_i32, %c0_i32_0 : i32, i32
  }
  func.func @transform_3(%arg0: i32) -> (i32, i32) {
    %c0_i32 = arith.constant 0 : i32
    %c0_i32_0 = arith.constant 0 : i32
    %c0_i32_1 = arith.constant 0 : i32
    return %c0_i32, %c0_i32_0 : i32, i32
  }
  func.func @transform_4(%arg0: i32) -> (i32, i32) {
    %c0_i32 = arith.constant 0 : i32
    %c0_i32_0 = arith.constant 0 : i32
    %c0_i32_1 = arith.constant 0 : i32
    return %c0_i32, %c0_i32_0 : i32, i32
  }
  func.func @transform_5(%arg0: i32) -> (i32, i32, i32) {
    %c0_i32 = arith.constant 0 : i32
    %c0_i32_0 = arith.constant 0 : i32
    %c0_i32_1 = arith.constant 0 : i32
    return %arg0, %c0_i32, %c0_i32_0 : i32, i32, i32
  }
}

</mosaic_0001>

<bundles_post_ra>
// kernel: tile.13
= control target key start
LH: loop header
LB: loop body
LE: loop exit
PB: predicated region body
PF: predicated region fallthrough
CT: control target
= control target key end

     0   :  { %s40_s0 = inlined_call_operand.vmem [shape: f32[4], index: 0, kind: input, shape index: {}]   ;;  %s41_s1 = inlined_call_operand.vmem [shape: f32[32,4], index: 1, kind: output, shape index: {}]  }
   0x1   :  { %v4_v0 = vld [vmem:[%s40_s0] ss:$0 sm:$0xff] }
   0x2   :  { %5 = vst [vmem:[%s41_s1] sm:$0xff] %v4_v0  ;;  %12 = vst [vmem:[%s41_s1 + $0x8] sm:$0xff] %v4_v0 }
   0x3   :  { %13 = vst [vmem:[%s41_s1 + $0x10] sm:$0xff] %v4_v0  ;;  %14 = vst [vmem:[%s41_s1 + $0x18] sm:$0xff] %v4_v0 }

// kernel: tile.14
= control target key start
LH: loop header
LB: loop body
LE: loop exit
PB: predicated region body
PF: predicated region fallthrough
CT: control target
= control target key end

     0   :  { %s259_s10 = smov 124   ;;  %s260_s11 = smov 116   ;;  %vm3_vm0 = vcmask 31744   ;;  %vm9_vm1 = vcmask 1048544   ;;  %vm15_vm2 = vcmask 1015744   ;;  %vm21_vm3 = vcmask 982944   ;;  %s399_s0 = inlined_call_operand.vmem [shape: f32[32,4], index: 0, kind: input, shape index: {}]   ;;  %s400_s1 = inlined_call_operand.vmem [shape: f32[1,128], index: 1, kind: output, shape index: {}]  }
   0x1   :  { %v197_v0 = vld [vmem:[%s399_s0 + $0x1f] sm:$0x1]   ;;  %v199_v1 = vld [vmem:[%s399_s0 + $0x1d] sm:$0x1]   ;;  %v198_v2 = vld [vmem:[%s399_s0 + $0x1e] sm:$0x1]  }
   0x2   :  { %7 = vrot.lane.b32.xlu0 %v197_v0, %s259_s10  ;;  %19 = vrot.lane.b32.xlu1 %v199_v1, %s260_s11  ;;  %v200_v3 = vld [vmem:[%s399_s0 + $0x1c] sm:$0x1]   ;;  %s261_s16 = smov 120   ;;  %s262_s17 = smov 112   ;;  %v201_v4 = vld [vmem:[%s399_s0 + $0x1b] sm:$0x1]  }
   0x3   :  { %v202_v5 = vld [vmem:[%s399_s0 + $0x1a] sm:$0x1]   ;;  %s263_s22 = smov 108   ;;  %s264_s23 = smov 104   ;;  %v203_v6 = vld [vmem:[%s399_s0 + $0x19] sm:$0x1]  }
   0x4   :  { %v204_v7 = vld [vmem:[%s399_s0 + $0x18] sm:$0x1]   ;;  %s265_s28 = smov 100   ;;  %s266_s29 = smov 96   ;;  %v205_v8 = vld [vmem:[%s399_s0 + $0x17] sm:$0x1]  }
   0x5   :  { %v206_v9 = vld [vmem:[%s399_s0 + $0x16] sm:$0x1]   ;;  %v2_v10 = vld [vmem:[%s399_s0] sm:$0x1]   ;;  %s267_s7 = smov 92   ;;  %s268_s8 = smov 88  }
   0x6   :  { %13 = vrot.lane.b32.xlu0 %v198_v2, %s261_s16  ;;  %25 = vrot.lane.b32.xlu1 %v200_v3, %s262_s17  ;;  %4 = vst.msk [vmem:[#allocation0] sm:$0x1] %vm3_vm0, %v2_v10   ;;  %v207_v11 = vld [vmem:[%s399_s0 + $0x15] sm:$0x1]   ;;  %v208_v12 = vld [vmem:[%s399_s0 + $0x14] sm:$0x1]  }
   0x7   :  { %s269_s13 = smov 84   ;;  %s270_s14 = smov 80   ;;  %v209_v13 = vld [vmem:[%s399_s0 + $0x13] sm:$0x1]   ;;  %v210_v14 = vld [vmem:[%s399_s0 + $0x12] sm:$0x1]  }
   0x8   :  { %s271_s19 = smov 76   ;;  %s272_s20 = smov 72   ;;  %v211_v15 = vld [vmem:[%s399_s0 + $0x11] sm:$0x1]   ;;  %v212_v16 = vld [vmem:[%s399_s0 + $0x10] sm:$0x1]  }
   0x9   :  { %s273_s25 = smov 68   ;;  %s274_s26 = smov 64   ;;  %v213_v17 = vld [vmem:[%s399_s0 + $0xf] sm:$0x1]   ;;  %v214_v18 = vld [vmem:[%s399_s0 + $0xe] sm:$0x1]  }
   0xa   :  { %31 = vrot.lane.b32.xlu0 %v201_v4, %s263_s22  ;;  %37 = vrot.lane.b32.xlu1 %v202_v5, %s264_s23  ;;  %s275_s2 = smov 60   ;;  %s276_s3 = smov 56   ;;  %v215_v19 = vld [vmem:[%s399_s0 + $0xd] sm:$0x1]   ;;  %v216_v20 = vld [vmem:[%s399_s0 + $0xc] sm:$0x1]  }
   0xb   :  { %s278_s9 = smov 48   ;;  %v217_v21 = vld [vmem:[%s399_s0 + $0xb] sm:$0x1]   ;;  %v218_v22 = vld [vmem:[%s399_s0 + $0xa] sm:$0x1]   ;;  %s280_s15 = smov 40  }
   0xc   :  { %v219_v23 = vld [vmem:[%s399_s0 + $0x9] sm:$0x1]   ;;  %v220_v24 = vld [vmem:[%s399_s0 + $0x8] sm:$0x1]   ;;  %s282_s21 = smov 32   ;;  %s284_s27 = smov 24  }
   0xd   :  { %v221_v25 = vld [vmem:[%s399_s0 + $0x7] sm:$0x1]   ;;  %v222_v26 = vld [vmem:[%s399_s0 + $0x6] sm:$0x1]   ;;  %v223_v27 = vld [vmem:[%s399_s0 + $0x5] sm:$0x1]  }
   0xe   :  { %43 = vrot.lane.b32.xlu0 %v203_v6, %s265_s28  ;;  %49 = vrot.lane.b32.xlu1 %v204_v7, %s266_s29  ;;  %v224_v28 = vld [vmem:[%s399_s0 + $0x4] sm:$0x1]   ;;  %s286_s4 = smov 16   ;;  %v225_v29 = vld [vmem:[%s399_s0 + $0x3] sm:$0x1]   ;;  %s288_s10 = smov 8  }
   0xf   :  { %v226_v30 = vld [vmem:[%s399_s0 + $0x2] sm:$0x1]   ;;  %v227_v31 = vld [vmem:[%s399_s0 + $0x1] sm:$0x1]   ;;  %s289_s0 = smov 4   ;;  %vm27_vm4 = vcmask 950144  }
  0x10   :  { %vm33_vm5 = vcmask 917344   ;;  %vm39_vm6 = vcmask 884544   ;;  %vm45_vm7 = vcmask 851744   ;;  %vm51_vm8 = vcmask 818944  }
  0x11   :  { %vm57_vm9 = vcmask 786144   ;;  %vm63_vm10 = vcmask 753344   ;;  %vm69_vm11 = vcmask 720544   ;;  %vm75_vm12 = vcmask 687744  }
  0x12   :  { %55 = vrot.lane.b32.xlu0 %v205_v8, %s267_s7  ;;  %61 = vrot.lane.b32.xlu1 %v206_v9, %s268_s8  ;;  %s277_s8 = smov 52   ;;  %vm81_vm13 = vcmask 654944   ;;  %vm87_vm14 = vcmask 622144   ;;  %vm93_vm15 = vcmask 589344   ;;  %vm99_vm0 = vcmask 556544  }
  0x16   :  { %67 = vrot.lane.b32.xlu0 %v207_v11, %s269_s13  ;;  %73 = vrot.lane.b32.xlu1 %v208_v12, %s270_s14  ;;  %s279_s14 = smov 44  }
  0x1a   :  { %79 = vrot.lane.b32.xlu0 %v209_v13, %s271_s19  ;;  %85 = vrot.lane.b32.xlu1 %v210_v14, %s272_s20  ;;  %s281_s20 = smov 36  }
  0x1e   :  { %91 = vrot.lane.b32.xlu0 %v211_v15, %s273_s25  ;;  %97 = vrot.lane.b32.xlu1 %v212_v16, %s274_s26  ;;  %s283_s26 = smov 28  }
  0x22   :  { %103 = vrot.lane.b32.xlu0 %v213_v17, %s275_s2  ;;  %109 = vrot.lane.b32.xlu1 %v214_v18, %s276_s3  ;;  %s285_s3 = smov 20  }
  0x26   :  { %115 = vrot.lane.b32.xlu0 %v215_v19, %s277_s8  ;;  %121 = vrot.lane.b32.xlu1 %v216_v20, %s278_s9  ;;  %s287_s9 = smov 12  }
  0x2a   :  { %127 = vrot.lane.b32.xlu0 %v217_v21, %s279_s14  ;;  %133 = vrot.lane.b32.xlu1 %v218_v22, %s280_s15 }
  0x2e   :  { %139 = vrot.lane.b32.xlu0 %v219_v23, %s281_s20  ;;  %145 = vrot.lane.b32.xlu1 %v220_v24, %s282_s21 }
  0x32   :  { %151 = vrot.lane.b32.xlu0 %v221_v25, %s283_s26  ;;  %157 = vrot.lane.b32.xlu1 %v222_v26, %s284_s27 }
  0x36   :  { %163 = vrot.lane.b32.xlu0 %v223_v27, %s285_s3  ;;  %169 = vrot.lane.b32.xlu1 %v224_v28, %s286_s4 }
  0x3a   :  { %175 = vrot.lane.b32.xlu0 %v225_v29, %s287_s9  ;;  %181 = vrot.lane.b32.xlu1 %v226_v30, %s288_s10 }
  0x3e   :  { %187 = vrot.lane.b32.xlu0 %v227_v31, %s289_s0 }
  0x74   :  { %v8_v32 = vpop.permute.xlu0 %7   ;;  %v20_v33 = vpop.permute.xlu1 %19  }
  0x75   :  { %10 = vst.msk [vmem:[#allocation0] sm:$0x1] %vm9_vm1, %v8_v32   ;;  %vm105_vm1 = vcmask 523744  }
  0x78   :  { %v14_v34 = vpop.permute.xlu0 %13   ;;  %v26_v35 = vpop.permute.xlu1 %25  }
  0x79   :  { %16 = vst.msk [vmem:[#allocation0] sm:$0x1] %vm15_vm2, %v14_v34   ;;  %vm111_vm2 = vcmask 490944  }
  0x7a   :  { %22 = vst.msk [vmem:[#allocation0] sm:$0x1] %vm21_vm3, %v20_v33   ;;  %vm117_vm3 = vcmask 458144  }
  0x7b   :  { %28 = vst.msk [vmem:[#allocation0] sm:$0x1] %vm27_vm4, %v26_v35   ;;  %vm123_vm4 = vcmask 425344  }
  0x7c   :  { %v32_v36 = vpop.permute.xlu0 %31   ;;  %v38_v37 = vpop.permute.xlu1 %37  }
  0x7d   :  { %34 = vst.msk [vmem:[#allocation0] sm:$0x1] %vm33_vm5, %v32_v36   ;;  %vm129_vm5 = vcmask 392544  }
  0x7e   :  { %40 = vst.msk [vmem:[#allocation0] sm:$0x1] %vm39_vm6, %v38_v37   ;;  %vm135_vm6 = vcmask 359744  }
  0x80   :  { %v44_v38 = vpop.permute.xlu0 %43   ;;  %v50_v39 = vpop.permute.xlu1 %49  }
  0x81   :  { %46 = vst.msk [vmem:[#allocation0] sm:$0x1] %vm45_vm7, %v44_v38   ;;  %vm141_vm7 = vcmask 326944  }
  0x82   :  { %52 = vst.msk [vmem:[#allocation0] sm:$0x1] %vm51_vm8, %v50_v39   ;;  %vm147_vm8 = vcmask 294144  }
  0x84   :  { %v56_v40 = vpop.permute.xlu0 %55   ;;  %v62_v41 = vpop.permute.xlu1 %61  }
  0x85   :  { %58 = vst.msk [vmem:[#allocation0] sm:$0x1] %vm57_vm9, %v56_v40   ;;  %vm153_vm9 = vcmask 261344  }
  0x86   :  { %64 = vst.msk [vmem:[#allocation0] sm:$0x1] %vm63_vm10, %v62_v41   ;;  %vm159_vm10 = vcmask 228544  }
  0x88   :  { %v68_v42 = vpop.permute.xlu0 %67   ;;  %v74_v43 = vpop.permute.xlu1 %73  }
  0x89   :  { %70 = vst.msk [vmem:[#allocation0] sm:$0x1] %vm69_vm11, %v68_v42   ;;  %vm165_vm11 = vcmask 195744  }
  0x8a   :  { %76 = vst.msk [vmem:[#allocation0] sm:$0x1] %vm75_vm12, %v74_v43   ;;  %vm171_vm12 = vcmask 162944  }
  0x8c   :  { %v80_v44 = vpop.permute.xlu0 %79   ;;  %v86_v45 = vpop.permute.xlu1 %85  }
  0x8d   :  { %82 = vst.msk [vmem:[#allocation0] sm:$0x1] %vm81_vm13, %v80_v44   ;;  %vm177_vm13 = vcmask 130144  }
  0x8e   :  { %88 = vst.msk [vmem:[#allocation0] sm:$0x1] %vm87_vm14, %v86_v45   ;;  %vm183_vm14 = vcmask 97344  }
  0x90   :  { %v92_v46 = vpop.permute.xlu0 %91   ;;  %v98_v47 = vpop.permute.xlu1 %97  }
  0x91   :  { %94 = vst.msk [vmem:[#allocation0] sm:$0x1] %vm93_vm15, %v92_v46   ;;  %vm189_vm15 = vcmask 64544  }
  0x92   :  { %100 = vst.msk [vmem:[#allocation0] sm:$0x1] %vm99_vm0, %v98_v47  }
  0x94   :  { %v104_v48 = vpop.permute.xlu0 %103   ;;  %v110_v49 = vpop.permute.xlu1 %109  }
  0x95   :  { %106 = vst.msk [vmem:[#allocation0] sm:$0x1] %vm105_vm1, %v104_v48  }
  0x96   :  { %112 = vst.msk [vmem:[#allocation0] sm:$0x1] %vm111_vm2, %v110_v49  }
  0x98   :  { %v116_v50 = vpop.permute.xlu0 %115   ;;  %v122_v51 = vpop.permute.xlu1 %121  }
  0x99   :  { %118 = vst.msk [vmem:[#allocation0] sm:$0x1] %vm117_vm3, %v116_v50  }
  0x9a   :  { %124 = vst.msk [vmem:[#allocation0] sm:$0x1] %vm123_vm4, %v122_v51  }
  0x9c   :  { %v128_v52 = vpop.permute.xlu0 %127   ;;  %v134_v53 = vpop.permute.xlu1 %133  }
  0x9d   :  { %130 = vst.msk [vmem:[#allocation0] sm:$0x1] %vm129_vm5, %v128_v52  }
  0x9e   :  { %136 = vst.msk [vmem:[#allocation0] sm:$0x1] %vm135_vm6, %v134_v53  }
  0xa0   :  { %v140_v54 = vpop.permute.xlu0 %139   ;;  %v146_v55 = vpop.permute.xlu1 %145  }
  0xa1   :  { %142 = vst.msk [vmem:[#allocation0] sm:$0x1] %vm141_vm7, %v140_v54  }
  0xa2   :  { %148 = vst.msk [vmem:[#allocation0] sm:$0x1] %vm147_vm8, %v146_v55  }
  0xa4   :  { %v152_v56 = vpop.permute.xlu0 %151   ;;  %v158_v57 = vpop.permute.xlu1 %157  }
  0xa5   :  { %154 = vst.msk [vmem:[#allocation0] sm:$0x1] %vm153_vm9, %v152_v56  }
  0xa6   :  { %160 = vst.msk [vmem:[#allocation0] sm:$0x1] %vm159_vm10, %v158_v57  }
  0xa8   :  { %v164_v58 = vpop.permute.xlu0 %163   ;;  %v170_v59 = vpop.permute.xlu1 %169  }
  0xa9   :  { %166 = vst.msk [vmem:[#allocation0] sm:$0x1] %vm165_vm11, %v164_v58  }
  0xaa   :  { %172 = vst.msk [vmem:[#allocation0] sm:$0x1] %vm171_vm12, %v170_v59  }
  0xac   :  { %v176_v60 = vpop.permute.xlu0 %175   ;;  %v182_v61 = vpop.permute.xlu1 %181  }
  0xad   :  { %178 = vst.msk [vmem:[#allocation0] sm:$0x1] %vm177_vm13, %v176_v60  }
  0xae   :  { %184 = vst.msk [vmem:[#allocation0] sm:$0x1] %vm183_vm14, %v182_v61  }
  0xb0   :  { %v188_v62 = vpop.permute.xlu0 %187  }
  0xb1   :  { %190 = vst.msk [vmem:[#allocation0] sm:$0x1] %vm189_vm15, %v188_v62  }
  0xb8   :  { %v194_v63 = vld [vmem:[#allocation0] sm:$0x1] }
  0xb9   :  { %196 = vst [vmem:[%s400_s1] sm:$0x1] %v194_v63 }

// kernel: basic_block_forward.1
= control target key start
LH: loop header
LB: loop body
LE: loop exit
PB: predicated region body
PF: predicated region fallthrough
CT: control target
= control target key end

     0   :  { %vm33_vm0 = vsmask.f32 256  ;;  %vm34_vm1 = vsmask.f32 4368  ;;  %vm80_vm2 = vcmask 1040384   ;;  %v1362_v12 = vmov 0.0   ;;  %s1829_s0 = inlined_call_operand.vmem [shape: bf16[1,2,16,64], index: 0, kind: input, shape index: {}]   ;;  %s1830_s1 = inlined_call_operand.vmem [shape: bf16[384,128], index: 1, kind: input, shape index: {}]   ;;  %s1831_s3 = inlined_call_operand.vmem [shape: bf16[384,128], index: 3, kind: input, shape index: {}]   ;;  %s1832_s2 = inlined_call_operand.vmem [shape: f32[1,128], index: 2, kind: input, shape index: {}]   ;;  %s1833_s4 = inlined_call_operand.vmem [shape: f32[1,128], index: 4, kind: input, shape index: {}]   ;;  %s1834_s5 = inlined_call_operand.vmem [shape: f32[1,33,128], index: 5, kind: output, shape index: {}]  }
   0x1   :  { %v32_v0 = vld [vmem:[%s1829_s0 + $0x4] sm:$0xf]  ;;  %v31_v1 = vld [vmem:[%s1829_s0] sm:$0xf]  ;;  %v1062_v6 = vld [vmem:[%s1829_s0 + $0x8] sm:$0xf]  ;;  %1233 = vmatprep.subr.bf16.mxu1 %v1362_v12 }
   0x2   :  { %v45_v2 = vshrl.u32 %v32_v0, 16  ;;  %v48_v3 = vshll.u32 %v32_v0, 16  ;;  %v37_v4 = vshrl.u32 %v31_v1, 16  ;;  %v40_v5 = vshll.u32 %v31_v1, 16  ;;  %v1063_v7 = vld [vmem:[%s1829_s0 + $0xc] sm:$0xf]  ;;  %vm595_vm3 = vmand %vm80_vm2, %vm33_vm0 }
   0x3   :  { %v596_v8 = vld [vmem:[#allocation3] sm:$0x1]  ;;  %v1303_v13 = vld [vmem:[%s1830_s1 + $0x80] sm:$0xff]   ;;  %v83_v14 = vrot.slane %v1062_v6, 7  ;;  %vm1416_vm4 = vmor %vm33_vm0, %vm34_vm1  ;;  %vm81_vm5 = vcmask 1044484   ;;  %s1363_s6 = smov 32  }
   0x4   :  { %v47_v9 = vrot.slane %v45_v2, 7  ;;  %v39_v10 = vrot.slane %v37_v4, 7  ;;  %v597_v11 = vsel %vm595_vm3, 0, %v596_v8  ;;  %1234 = vmatpush3.bf16.msra.mxu1 %v1303_v13  ;;  %v1304_v20 = vld [vmem:[%s1830_s1 + $0x40] sm:$0xff]   ;;  %v85_v22 = vrot.slane %v1063_v7, 7  ;;  %vm1430_vm6 = vmor %vm80_vm2, %vm81_vm5  ;;  %v1306_v24 = vld [vmem:[%s1830_s1 + $0x88] sm:$0xff]  }
   0x5   :  { %598 = vst [vmem:[#allocation3] sm:$0x1] %v597_v11  ;;  %v1305_v21 = vld [vmem:[%s1830_s1] sm:$0xff]   ;;  %1235 = vmatprep.subr.bf16.mxu1 %v1362_v12  ;;  %v84_v25 = vrot.slane %v83_v14, 4  ;;  %1143 = vmatprep.subr.bf16.mxu0 %v1304_v20  ;;  %v1307_v27 = vld [vmem:[%s1830_s1 + $0x48] sm:$0xff]   ;;  %v1364_v28 = vmov 0  }
   0x6   :  { %v52_v16 = vrot.slane %v47_v9, 4  ;;  %v50_v17 = vor.u32 %v48_v3, %v47_v9  ;;  %v42_v18 = vor.u32 %v40_v5, %v39_v10  ;;  %v43_v19 = vrot.slane %v39_v10, 4  ;;  %23 = vst [vmem:[#allocation2 + $0x8] sm:$0xf] %v1364_v28  ;;  %21 = vst [vmem:[#allocation2] sm:$0xf] %v1364_v28  ;;  %1144 = vmatpush3.bf16.msra.mxu0 %v1305_v21 }
   0x7   :  { %22 = vst [vmem:[#allocation2 + $0x4] sm:$0xf] %v1364_v28  ;;  %24 = vst [vmem:[#allocation2 + $0xc] sm:$0xf] %v1364_v28  ;;  %v1308_v29 = vld [vmem:[%s1830_s1 + $0x8] sm:$0xff]   ;;  %1145 = vmatprep.subr.bf16.mxu0 %v1307_v27  ;;  %v1309_v30 = vld [vmem:[%s1830_s1 + $0x90] sm:$0xff]   ;;  %v86_v32 = vsel %vm1430_vm6, %v84_v25, %v85_v22 }
   0x8   :  { %57 = vrot.lane.b32.xlu1 %v52_v16, %s1363_s6  ;;  %53 = vrot.lane.b32.xlu0 %v42_v18, %s1363_s6  ;;  %v51_v26 = vsel %vm1416_vm4, %v43_v19, %v50_v17  ;;  %v87_v31 = vrot.slane %v85_v22, 4  ;;  %v1310_v33 = vld [vmem:[%s1830_s1 + $0x50] sm:$0xff]   ;;  %v1312_v35 = vld [vmem:[%s1830_s1 + $0x98] sm:$0xff]   ;;  %vm25_vm7 = vcmask 1041408   ;;  %vm26_vm8 = vsmask.f32 1280 }
   0x9   :  { %1236 = vmatpush3.bf16.msra.mxu1 %v1306_v24  ;;  %v1311_v34 = vld [vmem:[%s1830_s1 + $0x10] sm:$0xff]   ;;  %v1313_v36 = vld [vmem:[%s1830_s1 + $0x58] sm:$0xff]   ;;  %vm599_vm9 = vcmask 1041409   ;;  %vm1365_vm10 = vmmov 0   ;;  %v1315_v38 = vld [vmem:[%s1830_s1 + $0xa0] sm:$0xff]   ;;  %vm70_vm13 = vcmask 778496  }
   0xa   :  { %1237 = vmatprep.subr.bf16.mxu1 %v1362_v12  ;;  %1146 = vmatpush3.bf16.msra.mxu0 %v1308_v29  ;;  %v1314_v37 = vld [vmem:[%s1830_s1 + $0x18] sm:$0xff]   ;;  %vm27_vm11 = vmand %vm25_vm7, %vm26_vm8  ;;  %v28_v39 = vld [vmem:[#allocation2 + $0x10] sm:$0x3]  ;;  %vm62_vm14 = vcmask 781568   ;;  %vm63_vm15 = vsmask.f32 7938 }
   0xb   :  { %1147 = vmatprep.subr.bf16.mxu0 %v1310_v33  ;;  %1249 = vmatprep.mubr.msk.bf16.mxu1 %vm1365_vm10, %v1362_v12  ;;  %vm600_vm12 = vmand %vm599_vm9, %vm26_vm8  ;;  %v601_v40 = vld [vmem:[#allocation3 + $0x10] sm:$0x2]  ;;  %v29_v41 = vsel %vm27_vm11, 0, %v28_v39  ;;  %v1318_v45 = vld [vmem:[%s1830_s1 + $0xa8] sm:$0xff]   ;;  %vm97_vm3 = vcmask 781569  }
   0xc   :  { %88 = vrot.lane.b32.xlu1 %v83_v14, %s1363_s6  ;;  %55 = vrot.lane.b32.xlu0 %v51_v26, %s1363_s6  ;;  %v602_v42 = vsel %vm600_vm12, 0, %v601_v40  ;;  %30 = vst [vmem:[#allocation2 + $0x10] sm:$0x3] %v29_v41  ;;  %v1316_v43 = vld [vmem:[%s1830_s1 + $0x60] sm:$0xff]   ;;  %v1319_v46 = vld [vmem:[%s1830_s1 + $0x68] sm:$0xff]   ;;  %vm71_vm1 = vmand %vm70_vm13, %vm33_vm0  ;;  %vm157_vm0 = vcmask 1046528  }
   0xd   :  { %1238 = vmatpush3.bf16.msra.mxu1 %v1309_v30  ;;  %603 = vst [vmem:[#allocation3 + $0x10] sm:$0x2] %v602_v42  ;;  %v1317_v44 = vld [vmem:[%s1830_s1 + $0x20] sm:$0xff]   ;;  %v1320_v47 = vld [vmem:[%s1830_s1 + $0x28] sm:$0xff]   ;;  %v1321_v48 = vld [vmem:[%s1830_s1 + $0xb0] sm:$0xff]  }
   0xe   :  { %1239 = vmatprep.subr.bf16.mxu1 %v1362_v12  ;;  %1148 = vmatpush3.bf16.msra.mxu0 %v1311_v34  ;;  %v1322_v49 = vld [vmem:[%s1830_s1 + $0x70] sm:$0xff]   ;;  %v1324_v51 = vld [vmem:[%s1830_s1 + $0xb8] sm:$0xff]   ;;  %v72_v54 = vld [vmem:[#allocation2 + $0x8] sm:$0x1]  ;;  %vm125_vm5 = vsmask.f32 7424 }
   0xf   :  { %1149 = vmatprep.subr.bf16.mxu0 %v1313_v36  ;;  %v1323_v50 = vld [vmem:[%s1830_s1 + $0x30] sm:$0xff]   ;;  %v1325_v52 = vld [vmem:[%s1830_s1 + $0x78] sm:$0xff]   ;;  %vm64_vm2 = vmand %vm62_vm14, %vm63_vm15 }
  0x10   :  { %92 = vrot.lane.b32.xlu1 %v87_v31, %s1363_s6  ;;  %90 = vrot.lane.b32.xlu0 %v86_v32, %s1363_s6  ;;  %v1326_v53 = vld [vmem:[%s1830_s1 + $0x38] sm:$0xff]   ;;  %v65_v55 = vld [vmem:[#allocation2] sm:$0xf] }
  0x11   :  { %1240 = vmatpush3.bf16.msra.mxu1 %v1312_v35  ;;  %v1332_v42 = vld [vmem:[%s1831_s3 + $0x40] sm:$0xff]  }
  0x12   :  { %1241 = vmatprep.subr.bf16.mxu1 %v1362_v12  ;;  %1150 = vmatpush3.bf16.msra.mxu0 %v1314_v37 }
  0x13   :  { %1151 = vmatprep.subr.bf16.mxu0 %v1316_v43  ;;  %v1333_v43 = vld [vmem:[%s1831_s3] sm:$0xff]  }
  0x15   :  { %1242 = vmatpush3.bf16.msra.mxu1 %v1315_v38 }
  0x16   :  { %1243 = vmatprep.subr.bf16.mxu1 %v1362_v12  ;;  %1152 = vmatpush3.bf16.msra.mxu0 %v1317_v44  ;;  %v1334_v44 = vld [vmem:[%s1831_s3 + $0x48] sm:$0xff]  }
  0x17   :  { %1153 = vmatprep.subr.bf16.mxu0 %v1319_v46  ;;  %v1336_v46 = vld [vmem:[%s1831_s3 + $0x50] sm:$0xff]  }
  0x19   :  { %1244 = vmatpush3.bf16.msra.mxu1 %v1318_v45  ;;  %v1335_v45 = vld [vmem:[%s1831_s3 + $0x8] sm:$0xff]  }
  0x1a   :  { %1245 = vmatprep.subr.bf16.mxu1 %v1362_v12  ;;  %1154 = vmatpush3.bf16.msra.mxu0 %v1320_v47  ;;  %v1337_v47 = vld [vmem:[%s1831_s3 + $0x10] sm:$0xff]  }
  0x1b   :  { %1155 = vmatprep.subr.bf16.mxu0 %v1322_v49  ;;  %v1338_v49 = vld [vmem:[%s1831_s3 + $0x58] sm:$0xff]  }
  0x1d   :  { %1246 = vmatpush3.bf16.msra.mxu1 %v1321_v48  ;;  %v1339_v48 = vld [vmem:[%s1831_s3 + $0x80] sm:$0xff]  }
  0x1e   :  { %1247 = vmatprep.subr.bf16.mxu1 %v1362_v12  ;;  %1156 = vmatpush3.bf16.msra.mxu0 %v1323_v50  ;;  %v1340_v50 = vld [vmem:[%s1831_s3 + $0x18] sm:$0xff]  }
  0x1f   :  { %1157 = vmatprep.subr.bf16.mxu0 %v1325_v52  ;;  %v1341_v52 = vld [vmem:[%s1831_s3 + $0x60] sm:$0xff]  }
  0x21   :  { %1248 = vmatpush3.bf16.msra.mxu1 %v1324_v51  ;;  %v1342_v51 = vld [vmem:[%s1831_s3 + $0x88] sm:$0xff]  }
  0x22   :  { %1261 = vmatprep.subr.bf16.mxu1 %v1362_v12  ;;  %1158 = vmatpush3.bf16.msra.mxu0 %v1326_v53  ;;  %v1343_v53 = vld [vmem:[%s1831_s3 + $0x20] sm:$0xff]  }
  0x23   :  { %1188 = vmatprep.subr.bf16.mxu0 %v1332_v42 }
  0x7a   :  { %v58_v56 = vpop.permute.xlu1 %57  ;;  %v54_v57 = vpop.permute.xlu0 %53 }
  0x7b   :  { %v73_v58 = vsel %vm71_vm1, %v58_v56, %v72_v54  ;;  %v66_v59 = vsel %vm64_vm2, %v54_v57, %v65_v55  ;;  %v1345_v54 = vld [vmem:[%s1831_s3 + $0x90] sm:$0xff]   ;;  %v1344_v55 = vld [vmem:[%s1831_s3 + $0x68] sm:$0xff]   ;;  %v1348_v57 = vld [vmem:[%s1831_s3 + $0x98] sm:$0xff]  }
  0x7c   :  { %74 = vst [vmem:[#allocation2 + $0x8] sm:$0x1] %v73_v58  ;;  %67 = vst [vmem:[#allocation2] sm:$0xf] %v66_v59  ;;  %v1346_v56 = vld [vmem:[%s1831_s3 + $0x28] sm:$0xff]   ;;  %v1347_v58 = vld [vmem:[%s1831_s3 + $0x70] sm:$0xff]  }
  0x7d   :  { %v1349_v59 = vld [vmem:[%s1831_s3 + $0x30] sm:$0xff]  }
  0x7e   :  { %v89_v60 = vpop.permute.xlu1 %88  ;;  %v56_v61 = vpop.permute.xlu0 %55 }
  0x7f   :  { %98 = vst.msk [vmem:[#allocation2 + $0x8] sm:$0xe] %vm97_vm3, %v89_v60  ;;  %v1350_v60 = vld [vmem:[%s1831_s3 + $0x78] sm:$0xff]  }
  0x80   :  { %69 = vst.msk [vmem:[#allocation2 + $0x4] sm:$0xf] %vm62_vm14, %v56_v61  ;;  %v1351_v61 = vld [vmem:[%s1831_s3 + $0xa0] sm:$0xff]  }
  0x82   :  { %v93_v62 = vpop.permute.xlu1 %92  ;;  %v91_v63 = vpop.permute.xlu0 %90 }
  0x83   :  { %101 = vst.msk [vmem:[#allocation2 + $0x10] sm:$0x1] %vm70_vm13, %v93_v62  ;;  %v102_v0 = vld [vmem:[#allocation2] sm:$0xf]  ;;  %v1352_v62 = vld [vmem:[%s1831_s3 + $0x38] sm:$0xff]  }
  0x84   :  { %99 = vst.msk [vmem:[#allocation2 + $0xc] sm:$0xf] %vm62_vm14, %v91_v63  ;;  %v1018_v1 = vunpack.c.l.bf16 %v102_v0  ;;  %v107_v5 = vld [vmem:[#allocation2] sm:$0xe]  ;;  %v1354_v63 = vld [vmem:[%s1831_s3 + $0xa8] sm:$0xff]  }
  0x86   :  { %v1029_v8 = vrot.slane %v1018_v1, 1  ;;  %v1357_v1 = vld [vmem:[%s1831_s3 + $0xb8] sm:$0xff]  }
  0x87   :  { %v103_v2 = vld [vmem:[#allocation2 + $0x4] sm:$0xf] }
  0x88   :  { %v1064_v3 = vcombine.low %v102_v0, %v103_v2  ;;  %v1019_v4 = vunpack.c.l.bf16 %v103_v2  ;;  %v1067_v6 = vcombine.low %v107_v5, %v103_v2  ;;  %v1355_v0 = vld [vmem:[%s1831_s3 + $0xb0] sm:$0xff]   ;;  %v477_v2 = vlaneseq }
  0x8a   :  { %v129_v7 = vshll.u32 %v1064_v3, 16  ;;  %v1030_v9 = vrot.slane %v1019_v4, 1  ;;  %v106_v11 = vld [vmem:[#allocation2 + $0x10] sm:$0x1]  ;;  %v127_v17 = vshrl.u32 %v1064_v3, 16  ;;  %v158_v21 = vrot.slane %v1067_v6, 1 }
  0x8b   :  { %v104_v10 = vld [vmem:[#allocation2 + $0x8] sm:$0xff]   ;;  %v1066_v14 = vcombine.low %v106_v11, %v106_v11  ;;  %v1022_v20 = vunpack.c.l.bf16 %v106_v11  ;;  %v1331_v30 = vld [vmem:[#allocation2 + $0x10] ss:$0 sps:$4 sm:$0x33]  }
  0x8c   :  { %v131_v13 = vrot.slane %v129_v7, 1  ;;  %v1522_v16 = vsel %vm157_vm0, %v1029_v8, %v1030_v9  ;;  %v1020_v18 = vunpack.c.l.bf16 %v104_v10  ;;  %v1021_v19 = vunpack.c.h.bf16 %v104_v10 }
  0x8d   :  { %v159_v22 = vrot.slane %v104_v10, 1  ;;  %v134_v23 = vshll.u32 %v104_v10, 16  ;;  %v138_v25 = vshrl.u32 %v104_v10, 16  ;;  %v142_v26 = vshll.u32 %v1066_v14, 16 }
  0x8e   :  { %v132_v24 = vor.u32 %v131_v13, %v127_v17  ;;  %v1524_v27 = vrot.slane %v1020_v18, 1  ;;  %v1527_v31 = vrot.slane %v1021_v19, 1  ;;  %v1529_v32 = vrot.slane %v1022_v20, 1 }
  0x8f   :  { %v160_v28 = vsel %vm157_vm0, %v158_v21, %v159_v22  ;;  %v136_v29 = vrot.slane %v134_v23, 1  ;;  %v144_v33 = vrot.slane %v142_v26, 1  ;;  %v161_v39 = vrot.slane %v1331_v30, 1 }
  0x90   :  { %1250 = vmatmul.mubr.bf16.vlgmr.msra.gmra.mrb[0].mxu1 %v160_v28  ;;  %v1533_v34 = vsel %vm157_vm0, %v1030_v9, %v1524_v27  ;;  %v1541_v37 = vsel %vm157_vm0, %v1527_v31, %v1529_v32  ;;  %v146_v41 = vshrl.u32 %v1066_v14, 16 }
  0x91   :  { %v137_v35 = vsel %vm125_vm5, %v132_v24, %v136_v29  ;;  %v140_v36 = vor.u32 %v138_v25, %v136_v29  ;;  %1253 = vmatprep.mubr.msk.bf16.mxu1 %vm1365_vm10, %v1362_v12  ;;  %v162_v40 = vsel %vm157_vm0, %v159_v22, %v161_v39  ;;  %1262 = vmatpush3.bf16.msra.mxu1 %v1339_v48 }
  0x92   :  { %397 = vmatprep.mubr.bf16.mxu0 %v137_v35  ;;  %1263 = vmatprep.subr.bf16.mxu1 %v1362_v12 }
  0x93   :  { %398 = vmatmul.mubr.bf16.vlgmr.msra.gmra.mrb[0].mxu0 %v1064_v3  ;;  %v145_v38 = vsel %vm125_vm5, %v140_v36, %v144_v33  ;;  %v478_v3 = vshrl.u32 %v477_v2, 7 }
  0x94   :  { %405 = vmatprep.mubr.bf16.mxu0 %v145_v38  ;;  %1189 = vmatpush3.bf16.msra.mxu0 %v1333_v43  ;;  %v1647_v38 = vand.u32 127, %v477_v2 }
  0x95   :  { %1190 = vmatprep.subr.bf16.mxu0 %v1334_v44  ;;  %1264 = vmatpush3.bf16.msra.mxu1 %v1342_v51  ;;  %v479_v4 = vadd.s32 8, %v478_v3  ;;  %v1628_v5 = vmul.u32.u64.low 4042322161, %v478_v3  ;;  %v1629_v6 = vmul.u32.u64.high 4042322161, %v478_v3, %v1628_v5  ;;  %v480_v9 = vadd.s32 16, %v478_v3 }
  0x96   :  { %1265 = vmatprep.subr.bf16.mxu1 %v1362_v12  ;;  %v481_v11 = vadd.s32 24, %v478_v3  ;;  %v482_v22 = vadd.s32 32, %v478_v3  ;;  %vm570_vm14 = vcmp.ge.s32.totalorder %v1647_v38, 32 }
  0x97   :  { %v1631_v7 = vmul.u32.u64.low 4042322161, %v479_v4  ;;  %v1632_v8 = vmul.u32.u64.high 4042322161, %v479_v4, %v1631_v7 }
  0x98   :  { %1254 = vmatmul.mubr.bf16.gmra.mrb[4].mxu1 %v162_v40  ;;  %1191 = vmatpush3.bf16.msra.mxu0 %v1335_v45  ;;  %v1639_v19 = vmul.u32.u64.low 4042322161, %v481_v11  ;;  %v1640_v20 = vmul.u32.u64.high 4042322161, %v481_v11, %v1639_v19  ;;  %v1643_v26 = vmul.u32.u64.low 4042322161, %v482_v22  ;;  %v1644_v28 = vmul.u32.u64.high 4042322161, %v482_v22, %v1643_v26 }
  0x99   :  { %1257 = vmatprep.mubr.msk.bf16.mxu1 %vm1365_vm10, %v1362_v12  ;;  %1192 = vmatprep.subr.bf16.mxu0 %v1336_v46  ;;  %v502_v13 = vshrl.u32 %v1632_v8, 4 }
  0x9a   :  { %1266 = vmatpush3.bf16.msra.mxu1 %v1345_v54  ;;  %v524_v29 = vshrl.u32 %v1640_v20, 4  ;;  %v535_v42 = vshrl.u32 %v1644_v28, 4 }
  0x9b   :  { %406 = vmatmul.mubr.bf16.gmra.mrb[4].mxu0 %v104_v10  ;;  %1267 = vmatprep.subr.bf16.mxu1 %v1362_v12  ;;  %v491_v10 = vshrl.u32 %v1629_v6, 4  ;;  %v503_v21 = vmul.u32 17, %v502_v13 }
  0x9c   :  { %413 = vmatprep.mubr.bf16.mxu0 %v146_v41  ;;  %1193 = vmatpush3.bf16.msra.mxu0 %v1337_v47  ;;  %v525_v36 = vmul.u32 17, %v524_v29 }
  0x9d   :  { %1194 = vmatprep.subr.bf16.mxu0 %v1338_v49  ;;  %v492_v18 = vmul.u32 17, %v491_v10  ;;  %v504_v24 = vsub.s32 %v479_v4, %v503_v21  ;;  %v536_v49 = vmul.u32 17, %v535_v42 }
  0x9e   :  { %1268 = vmatpush3.bf16.msra.mxu1 %v1348_v57  ;;  %v526_v44 = vsub.s32 %v481_v11, %v525_v36 }
  0x9f   :  { %1269 = vmatprep.subr.bf16.mxu1 %v1362_v12  ;;  %v493_v23 = vsub.s32 %v478_v3, %v492_v18  ;;  %vm541_vm8 = vcmp.ne.s32.totalorder %v504_v24, 0  ;;  %vm546_vm9 = vcmp.lt.s32.totalorder %v504_v24, 0  ;;  %v556_v33 = vadd.s32 17, %v504_v24 }
  0xa0   :  { %1258 = vmatmul.mubr.bf16.gmra.mrb[8].mxu1 %v161_v39  ;;  %1195 = vmatpush3.bf16.msra.mxu0 %v1340_v50  ;;  %vm551_vm12 = vmand %vm546_vm9, %vm541_vm8  ;;  %v1654_v50 = vld [vmem:[%s1832_s2] ss:$0 sm:$0xff]  ;;  %vm576_vm9 = vcmp.lt.s32.totalorder %v1647_v38, 96 }
  0xa1   :  { %1277 = vmatprep.mubr.msk.bf16.mxu1 %vm1365_vm10, %v1362_v12  ;;  %1196 = vmatprep.subr.bf16.mxu0 %v1341_v52  ;;  %vm540_vm6 = vcmp.ne.s32.totalorder %v493_v23, 0  ;;  %vm545_vm7 = vcmp.lt.s32.totalorder %v493_v23, 0  ;;  %v555_v30 = vadd.s32 17, %v493_v23  ;;  %v561_v40 = vsel %vm551_vm12, %v556_v33, %v504_v24 }
  0xa2   :  { %1270 = vmatpush3.bf16.msra.mxu1 %v1351_v61  ;;  %vm550_vm11 = vmand %vm545_vm7, %vm540_vm6  ;;  %vm566_vm1 = vcmp.lt.s32.totalorder %v561_v40, 16  ;;  %vm543_vm6 = vcmp.ne.s32.totalorder %v526_v44, 0  ;;  %vm548_vm7 = vcmp.lt.s32.totalorder %v526_v44, 0 }
  0xa3   :  { %414 = vmatmul.mubr.bf16.gmra.mrb[8].mxu0 %v1066_v14  ;;  %1271 = vmatprep.subr.bf16.mxu1 %v1362_v12  ;;  %v1636_v14 = vmul.u32.u64.low 4042322161, %v480_v9  ;;  %v1637_v17 = vmul.u32.u64.high 4042322161, %v480_v9, %v1636_v14  ;;  %v560_v39 = vsel %vm550_vm11, %v555_v30, %v493_v23  ;;  %vm1664_vm8 = vmand %vm566_vm1, %vm570_vm14 }
  0xa4   :  { %1197 = vmatpush3.bf16.msra.mxu0 %v1343_v53  ;;  %vm565_vm13 = vcmp.lt.s32.totalorder %v560_v39, 16  ;;  %vm1674_vm12 = vmand %vm548_vm7, %vm543_vm6 }
  0xa5   :  { %1198 = vmatprep.subr.bf16.mxu0 %v1344_v55  ;;  %v513_v25 = vshrl.u32 %v1637_v17, 4  ;;  %vm1658_vm5 = vmand %vm565_vm13, %vm570_vm14  ;;  %v663_v55 = vld [vmem:[#allocation3] sm:$0xf] }
  0xa6   :  { %1272 = vmatpush3.bf16.msra.mxu1 %v1354_v63  ;;  %v537_v63 = vsub.s32 %v482_v22, %v536_v49  ;;  %vm1683_vm13 = vmand %vm1658_vm5, %vm576_vm9 }
  0xa7   :  { %1273 = vmatprep.subr.bf16.mxu1 %v1362_v12  ;;  %v514_v35 = vmul.u32 17, %v513_v25  ;;  %vm1693_vm1 = vmand %vm1664_vm8, %vm576_vm9 }
  0xa8   :  { %1199 = vmatpush3.bf16.msra.mxu0 %v1346_v56  ;;  %vm1129_vm6 = vmpackc.low %vm1693_vm1, %vm1683_vm13  ;;  %v559_v22 = vadd.s32 17, %v537_v63 }
  0xa9   :  { %1200 = vmatprep.subr.bf16.mxu0 %v1347_v58  ;;  %v515_v41 = vsub.s32 %v480_v9, %v514_v35 }
  0xaa   :  { %1274 = vmatpush3.bf16.msra.mxu1 %v1355_v0 }
  0xab   :  { %1275 = vmatprep.subr.bf16.mxu1 %v1362_v12  ;;  %vm542_vm2 = vcmp.ne.s32.totalorder %v515_v41, 0  ;;  %vm547_vm3 = vcmp.lt.s32.totalorder %v515_v41, 0  ;;  %v557_v56 = vadd.s32 17, %v515_v41 }
  0xac   :  { %1201 = vmatpush3.bf16.msra.mxu0 %v1349_v59  ;;  %vm1669_vm11 = vmand %vm547_vm3, %vm542_vm2  ;;  %v558_v59 = vadd.s32 17, %v526_v44  ;;  %vm544_vm2 = vcmp.ne.s32.totalorder %v537_v63, 0  ;;  %vm549_vm3 = vcmp.lt.s32.totalorder %v537_v63, 0 }
  0xad   :  { %1202 = vmatprep.subr.bf16.mxu0 %v1350_v60  ;;  %v562_v5 = vsel %vm1669_vm11, %v557_v56, %v515_v41  ;;  %vm1713_vm8 = vmand %vm549_vm3, %vm544_vm2 }
  0xae   :  { %1276 = vmatpush3.bf16.msra.mxu1 %v1357_v1  ;;  %v563_v8 = vsel %vm1674_vm12, %v558_v59, %v526_v44  ;;  %vm1699_vm5 = vcmp.lt.s32.totalorder %v562_v5, 16  ;;  %vm661_vm12 = vcmask 1043456  }
  0xaf   :  { %vm1709_vm7 = vcmp.lt.s32.totalorder %v563_v8, 16  ;;  %vm1724_vm11 = vmand %vm1699_vm5, %vm570_vm14 }
  0xb0   :  { %1203 = vmatpush3.bf16.msra.mxu0 %v1352_v62  ;;  %vm1738_vm2 = vmand %vm1709_vm7, %vm570_vm14 }
  0xb1   :  { %vm1762_vm3 = vmand %vm1738_vm2, %vm576_vm9 }
 0x163   :  { %v455_v43 = vpop.f32.mrb[0].mxu1 }
 0x164   :  { %v1251_v45 = vpop.f32.mrb[1].mxu1 }
 0x165   :  { %v458_v46 = vpop.f32.mrb[2].mxu1  ;;  %v564_v45 = vsel %vm1713_vm8, %v559_v22, %v537_v63 }
 0x166   :  { %v1159_v47 = vpop.f32.mrb[0].mxu0  ;;  %v1252_v48 = vpop.f32.mrb[3].mxu1 }
 0x167   :  { %v1160_v51 = vpop.f32.mrb[1].mxu0 }
 0x168   :  { %v1161_v53 = vadd.f32 %v1160_v51, %v1159_v47  ;;  %v1162_v54 = vpop.f32.mrb[2].mxu0 }
 0x169   :  { %v1163_v57 = vpop.f32.mrb[3].mxu0 }
 0x16a   :  { %v400_v60 = vadd.f32 %v1161_v53, %v1654_v50  ;;  %v1164_v61 = vadd.f32 %v1163_v57, %v1162_v54 }
 0x16b   :  { %v463_v0 = vpop.f32.mrb[4].mxu1 }
 0x16c   :  { %v456_v1 = vadd.f32 %v455_v43, %v400_v60  ;;  %v403_v2 = vadd.f32 %v1164_v61, %v1654_v50  ;;  %v1255_v3 = vpop.f32.mrb[5].mxu1 }
 0x16d   :  { %v466_v6 = vpop.f32.mrb[6].mxu1 }
 0x16e   :  { %v582_v9 = vmax.f32 %v456_v1, 0.0  ;;  %v459_v10 = vadd.f32 %v458_v46, %v403_v2  ;;  %v1165_v11 = vpop.f32.mrb[4].mxu0  ;;  %v1256_v13 = vpop.f32.mrb[7].mxu1 }
 0x16f   :  { %v1166_v14 = vpop.f32.mrb[5].mxu0 }
 0x170   :  { %v583_v18 = vmax.f32 %v459_v10, 0.0  ;;  %v1167_v19 = vadd.f32 %v1166_v14, %v1165_v11  ;;  %v1168_v20 = vpop.f32.mrb[6].mxu0  ;;  %v587_v21 = vsel %vm1683_vm13, %v582_v9, 0.0  ;;  %vm1748_vm13 = vmand %vm1724_vm11, %vm576_vm9 }
 0x171   :  { %v1169_v23 = vpop.f32.mrb[7].mxu0  ;;  %v1138_v24 = vpack.c.bf16 %v587_v21, %v587_v21 }
 0x172   :  { %v1130_v28 = vpack.c.bf16 %v583_v18, %v582_v9  ;;  %v408_v29 = vadd.f32 %v1167_v19, %v1654_v50  ;;  %v1170_v30 = vadd.f32 %v1169_v23, %v1168_v20  ;;  %v588_v33 = vsel %vm1693_vm1, %v583_v18, 0.0  ;;  %vm1754_vm1 = vmand %vm661_vm12, %vm63_vm15 }
 0x173   :  { %v471_v36 = vpop.f32.mrb[8].mxu1  ;;  %v1139_v39 = vpack.c.bf16 %v588_v33, %v588_v33  ;;  %v618_v40 = vshrl.u32 %v1138_v24, 16  ;;  %v621_v47 = vshll.u32 %v1138_v24, 16  ;;  %vm569_vm15 = vcmp.lt.s32.totalorder %v564_v45, 16 }
 0x174   :  { %v464_v41 = vadd.f32 %v463_v0, %v408_v29  ;;  %v411_v42 = vadd.f32 %v1170_v30, %v1654_v50  ;;  %v1259_v43 = vpop.f32.mrb[9].mxu1  ;;  %1131 = vmatprep.mubr.msk.bf16.mxu0 %vm1129_vm6, %v1130_v28  ;;  %vm575_vm5 = vmand %vm569_vm15, %vm570_vm14 }
 0x175   :  { %v620_v46 = vrot.slane %v618_v40, 7  ;;  %v626_v48 = vshrl.u32 %v1139_v39, 16  ;;  %v474_v49 = vpop.f32.mrb[10].mxu1  ;;  %v629_v60 = vshll.u32 %v1139_v39, 16  ;;  %vm1779_vm6 = vmand %vm575_vm5, %vm576_vm9 }
 0x176   :  { %v584_v53 = vmax.f32 %v464_v41, 0.0  ;;  %v467_v54 = vadd.f32 %v466_v6, %v411_v42  ;;  %v1171_v56 = vpop.f32.mrb[8].mxu0  ;;  %v1260_v57 = vpop.f32.mrb[11].mxu1  ;;  %vm1132_vm14 = vmpackc.low %vm1762_vm3, %vm1748_vm13 }
 0x177   :  { %v623_v58 = vor.u32 %v621_v47, %v620_v46  ;;  %v628_v59 = vrot.slane %v626_v48, 7  ;;  %v1172_v61 = vpop.f32.mrb[9].mxu0  ;;  %v624_v3 = vrot.slane %v620_v46, 4  ;;  %vm1135_vm9 = vmpackc.low %vm1779_vm6, %vm1779_vm6 }
 0x178   :  { %v585_v63 = vmax.f32 %v467_v54, 0.0  ;;  %v1173_v0 = vadd.f32 %v1172_v61, %v1171_v56  ;;  %v1174_v1 = vpop.f32.mrb[10].mxu0  ;;  %v589_v2 = vsel %vm1748_vm13, %v584_v53, 0.0 }
 0x179   :  { %v631_v4 = vor.u32 %v629_v60, %v628_v59  ;;  %v664_v5 = vsel %vm1754_vm1, %v623_v58, %v663_v55  ;;  %v1175_v6 = vpop.f32.mrb[11].mxu0  ;;  %v1140_v7 = vpack.c.bf16 %v589_v2, %v589_v2  ;;  %v633_v22 = vrot.slane %v628_v59, 4  ;;  %v1104_v60 = vld [vmem:[%s1833_s4] ss:$0 sm:$0xff] }
 0x17a   :  { %v1133_v8 = vpack.c.bf16 %v585_v63, %v584_v53  ;;  %665 = vst [vmem:[#allocation3] sm:$0xf] %v664_v5  ;;  %v416_v9 = vadd.f32 %v1173_v0, %v1654_v50  ;;  %v590_v10 = vsel %vm1762_vm3, %v585_v63, 0.0 }
 0x17b   :  { %v632_v11 = vsel %vm1416_vm4, %v624_v3, %v631_v4  ;;  %v1141_v13 = vpack.c.bf16 %v590_v10, %v590_v10  ;;  %v635_v14 = vshrl.u32 %v1140_v7, 16  ;;  %v638_v19 = vshll.u32 %v1140_v7, 16 }
 0x17c   :  { %666 = vst [vmem:[#allocation3 + $0x4] sm:$0xf] %v632_v11  ;;  %v472_v17 = vadd.f32 %v471_v36, %v416_v9 }
 0x17d   :  { %v637_v18 = vrot.slane %v635_v14, 7  ;;  %v644_v20 = vshrl.u32 %v1141_v13, 16  ;;  %v647_v25 = vshll.u32 %v1141_v13, 16 }
 0x17e   :  { %v586_v21 = vmax.f32 %v472_v17, 0.0 }
 0x17f   :  { %v640_v23 = vor.u32 %v638_v19, %v637_v18  ;;  %v646_v24 = vrot.slane %v644_v20, 7  ;;  %v642_v29 = vrot.slane %v637_v18, 4 }
 0x180   :  { %v591_v26 = vsel %vm1779_vm6, %v586_v21, 0.0  ;;  %v1136_v46 = vpack.c.bf16 %v586_v21, %v586_v21 }
 0x181   :  { %v641_v28 = vsel %vm1416_vm4, %v633_v22, %v640_v23  ;;  %v649_v30 = vor.u32 %v647_v25, %v646_v24  ;;  %v1142_v33 = vpack.c.bf16 %v591_v26, %v591_v26  ;;  %v670_v38 = vld [vmem:[#allocation3] sm:$0xf]  ;;  %v651_v39 = vrot.slane %v646_v24, 4 }
 0x182   :  { %667 = vst [vmem:[#allocation3 + $0x8] sm:$0xf] %v641_v28  ;;  %v675_v43 = vld [vmem:[#allocation3] sm:$0xe] }
 0x183   :  { %v671_v35 = vld [vmem:[#allocation3 + $0x4] sm:$0xf]  ;;  %v650_v36 = vsel %vm1416_vm4, %v642_v29, %v649_v30  ;;  %v653_v40 = vshll.u32 %v1142_v33, 16 }
 0x184   :  { %v1099_v41 = vcombine.low %v670_v38, %v671_v35  ;;  %668 = vst [vmem:[#allocation3 + $0xc] sm:$0xf] %v650_v36  ;;  %v1102_v44 = vcombine.low %v675_v43, %v671_v35 }
 0x185   :  { %v655_v42 = vsel %vm1416_vm4, %v651_v39, %v653_v40 }
 0x186   :  { %939 = vmatmul.mubr.bf16.vlgmr.msra.gmra.mrb[12].mxu0 %v1099_v41  ;;  %669 = vst [vmem:[#allocation3 + $0x10] sm:$0x1] %v655_v42  ;;  %v699_v48 = vrot.slane %v1102_v44, 1 }
 0x187   :  { %1134 = vmatprep.mubr.msk.bf16.mxu0 %vm1132_vm14, %v1133_v8 }
 0x18b   :  { %v1356_v45 = vld [vmem:[#allocation3 + $0x8] sm:$0xff]  }
 0x18c   :  { %v700_v47 = vrot.slane %v1356_v45, 1 }
 0x18d   :  { %v1360_v51 = vld [vmem:[#allocation3 + $0x10] ss:$0 sps:$4 sm:$0x33]  }
 0x18e   :  { %947 = vmatmul.mubr.bf16.gmra.mrb[16].mxu0 %v1356_v45  ;;  %v701_v49 = vsel %vm157_vm0, %v699_v48, %v700_v47  ;;  %v702_v15 = vrot.slane %v1360_v51, 1  ;;  %v1359_v52 = vld [vmem:[#allocation3 + $0x10] ss:$0 sps:$4 sm:$0x11]  }
 0x18f   :  { %1137 = vmatprep.mubr.msk.bf16.mxu0 %vm1135_vm9, %v1136_v46  ;;  %1278 = vmatmul.mubr.bf16.vlgmr.msra.gmra.mrb[12].mxu1 %v701_v49 }
 0x190   :  { %1281 = vmatprep.mubr.msk.bf16.mxu1 %vm1365_vm10, %v1362_v12  ;;  %v703_v53 = vsel %vm157_vm0, %v700_v47, %v702_v15 }
 0x196   :  { %955 = vmatmul.mubr.bf16.gmra.mrb[20].mxu0 %v1359_v52 }
 0x197   :  { %1282 = vmatmul.mubr.bf16.gmra.mrb[16].mxu1 %v703_v53 }
 0x198   :  { %1285 = vmatprep.mubr.msk.bf16.mxu1 %vm1365_vm10, %v1362_v12 }
 0x19f   :  { %1286 = vmatmul.mubr.bf16.gmra.mrb[20].mxu1 %v702_v15 }
 0x259   :  { %v1204_v54 = vpop.f32.mrb[12].mxu0 }
 0x25a   :  { %v1205_v55 = vpop.f32.mrb[13].mxu0 }
 0x25b   :  { %v1206_v56 = vadd.f32 %v1205_v55, %v1204_v54  ;;  %v1207_v57 = vpop.f32.mrb[14].mxu0 }
 0x25c   :  { %v1208_v58 = vpop.f32.mrb[15].mxu0 }
 0x25d   :  { %v1209_v59 = vadd.f32 %v1208_v58, %v1207_v57  ;;  %v941_v63 = vadd.f32 %v1206_v56, %v1104_v60 }
 0x25f   :  { %v944_v5 = vadd.f32 %v1209_v59, %v1104_v60 }
 0x261   :  { %v1210_v61 = vpop.f32.mrb[16].mxu0 }
 0x262   :  { %v1211_v62 = vpop.f32.mrb[17].mxu0  ;;  %v996_v2 = vpop.f32.mrb[12].mxu1 }
 0x263   :  { %v1212_v0 = vadd.f32 %v1211_v62, %v1210_v61  ;;  %v1213_v1 = vpop.f32.mrb[18].mxu0  ;;  %v997_v4 = vadd.f32 %v996_v2, %v941_v63  ;;  %v1279_v12 = vpop.f32.mrb[13].mxu1 }
 0x264   :  { %v1214_v3 = vpop.f32.mrb[19].mxu0  ;;  %v999_v7 = vpop.f32.mrb[14].mxu1 }
 0x265   :  { %v1215_v6 = vadd.f32 %v1214_v3, %v1213_v1  ;;  %v1043_v8 = vadd.f32 %v1522_v16, %v997_v4  ;;  %v1000_v9 = vadd.f32 %v999_v7, %v944_v5  ;;  %v1280_v10 = vpop.f32.mrb[15].mxu1  ;;  %v949_v19 = vadd.f32 %v1212_v0, %v1104_v60 }
 0x267   :  { %v1048_v11 = vmax.f32 %v1043_v8, 0.0  ;;  %v1044_v13 = vadd.f32 %v1533_v34, %v1000_v9  ;;  %v952_v24 = vadd.f32 %v1215_v6, %v1104_v60  ;;  %v1035_v34 = vsel %vm157_vm0, %v1524_v27, %v1527_v31 }
 0x269   :  { %v1216_v14 = vpop.f32.mrb[20].mxu0  ;;  %1053 = vst [vmem:[%s1834_s5] sm:$0xff] %v1048_v11  ;;  %v1049_v17 = vmax.f32 %v1044_v13, 0.0 }
 0x26a   :  { %v1217_v18 = vpop.f32.mrb[21].mxu0  ;;  %v1004_v21 = vpop.f32.mrb[16].mxu1 }
 0x26b   :  { %v1218_v20 = vadd.f32 %v1217_v18, %v1216_v14  ;;  %v1219_v50 = vpop.f32.mrb[22].mxu0  ;;  %1054 = vst [vmem:[%s1834_s5 + $0x8] sm:$0xff] %v1049_v17  ;;  %v1005_v22 = vadd.f32 %v1004_v21, %v949_v19  ;;  %v1283_v23 = vpop.f32.mrb[17].mxu1 }
 0x26c   :  { %v1220_v16 = vpop.f32.mrb[23].mxu0  ;;  %v1007_v25 = vpop.f32.mrb[18].mxu1 }
 0x26d   :  { %v1045_v26 = vadd.f32 %v1035_v34, %v1005_v22  ;;  %v1008_v28 = vadd.f32 %v1007_v25, %v952_v24  ;;  %v1284_v29 = vpop.f32.mrb[19].mxu1  ;;  %v957_v35 = vadd.f32 %v1218_v20, %v1104_v60 }
 0x26f   :  { %v1050_v30 = vmax.f32 %v1045_v26, 0.0  ;;  %v1046_v33 = vadd.f32 %v1541_v37, %v1008_v28 }
 0x271   :  { %1055 = vst [vmem:[%s1834_s5 + $0x10] sm:$0xff] %v1050_v30  ;;  %v1051_v38 = vmax.f32 %v1046_v33, 0.0 }
 0x272   :  { %v1012_v36 = vpop.f32.mrb[20].mxu1 }
 0x273   :  { %1056 = vst [vmem:[%s1834_s5 + $0x18] sm:$0xff] %v1051_v38  ;;  %v1013_v39 = vadd.f32 %v1012_v36, %v957_v35  ;;  %v1287_v27 = vpop.f32.mrb[21].mxu1 }
 0x274   :  { %v1015_v31 = vpop.f32.mrb[22].mxu1 }
 0x275   :  { %v1047_v40 = vadd.f32 %v1529_v32, %v1013_v39  ;;  %v1288_v41 = vpop.f32.mrb[23].mxu1 }
 0x277   :  { %v1052_v42 = vmax.f32 %v1047_v40, 0.0 }
 0x279   :  { %1057 = vst [vmem:[%s1834_s5 + $0x20] sm:$0x1] %v1052_v42 }

</bundles_post_ra>
